<compile_context>
chip_gen: v7x
topology: tpu7x:2x2x1
jax: 0.10.0
libtpu: 0.0.40
codegen_flags: <defaults>
</compile_context>

<pallas_src>
import functools

import jax
import jax.numpy as jnp
from jax.experimental import pallas as pl
from jax.experimental.pallas import tpu as pltpu


def _round_up(x, m):
    return (x + m - 1) // m * m


def _mlp_kernel(x_ref, w1_ref, b1_ref, w2_ref, b2_ref, w3_ref, b3_ref, o_ref):
    # x: (TB, in_dim) f32 straight from HBM; cast to bf16 in-register.
    x = x_ref[...].astype(jnp.bfloat16)
    h1 = jnp.dot(x, w1_ref[...], preferred_element_type=jnp.float32) + b1_ref[...]
    h1 = jnp.maximum(h1, 0.0).astype(jnp.bfloat16)
    h2 = jnp.dot(h1, w2_ref[...], preferred_element_type=jnp.float32) + b2_ref[...]
    h2 = jnp.maximum(h2, 0.0).astype(jnp.bfloat16)
    out = jnp.dot(h2, w3_ref[...], preferred_element_type=jnp.float32) + b3_ref[...]
    o_ref[...] = out.astype(jnp.bfloat16)  # f32 accumulate, bf16 store


def prepare_params(params):
    """Pad + cast the (f32) parameters ONCE, outside the per-call path.

    Weights -> bf16; w1 rows stay UNPADDED (the raw activation is fed to the
    kernel), all hidden/output feature dims are zero-padded to multiples of
    128.  Biases -> f32 (added to the f32 accumulator), padded likewise.
    Returns (padded_param_tuple, out_dim).
    """
    (w1, b1), (w2, b2), (w3, b3) = params
    in_dim, h1_dim = w1.shape
    h2_dim = w2.shape[1]
    out_dim = w3.shape[1]

    h1_p = _round_up(h1_dim, 128)
    h2_p = _round_up(h2_dim, 128)
    out_p = _round_up(out_dim, 128)

    def pad_w(w, rp, cp):
        return (jnp.zeros((rp, cp), jnp.bfloat16)
                .at[: w.shape[0], : w.shape[1]]
                .set(w.astype(jnp.bfloat16)))

    def pad_b(b, cp):
        return (jnp.zeros((1, cp), jnp.float32)
                .at[:, : b.shape[0]]
                .set(b.astype(jnp.float32)[None, :]))

    padded = (
        pad_w(w1, in_dim, h1_p), pad_b(b1, h1_p),   # w1 rows unpadded
        pad_w(w2, h1_p, h2_p), pad_b(b2, h2_p),
        pad_w(w3, h2_p, out_p), pad_b(b3, out_p),
    )
    return padded, out_dim


@functools.partial(jax.jit, static_argnames=("out_dim",))
def multi_dmodel_forward(state, padded_params, out_dim):
    """state: (B, action_dim) f32 -> (B, context_dim) f32."""
    w1p, b1p, w2p, b2p, w3p, b3p = padded_params
    B, in_dim = state.shape
    h1_p = w1p.shape[1]
    h2_p = w2p.shape[1]
    out_p = w3p.shape[1]

    # Batch tile:
    #  * tiny B: one fully in-bounds block (block dim == full array dim);
    #  * B <= 512: single tile rounded to 16 rows (bf16 sublane packing);
    #  * large B: 512-row tiles (multiple of 256) -> amortized per-step
    #    overhead and >=2 grid steps so "parallel" can use both v7x TCs.
    if B <= 16:
        TB = B
    elif B <= 512:
        TB = _round_up(B, 16)
    else:
        TB = 512
    grid = (pl.cdiv(B, TB),)

    const = lambda i: (0, 0)  # weights/biases stay VMEM-resident across steps

    flops = 2 * B * (in_dim * h1_p + h1_p * h2_p + h2_p * out_p)
    bytes_accessed = (
        B * in_dim * 4                                        # x (f32, unpadded)
        + (in_dim * h1_p + h1_p * h2_p + h2_p * out_p) * 2    # weights (bf16)
        + (h1_p + h2_p + out_p) * 4                           # biases (f32)
        + B * out_p * 2                                       # output (bf16)
    )

    out = pl.pallas_call(
        _mlp_kernel,
        out_shape=jax.ShapeDtypeStruct((B, out_p), jnp.bfloat16),
        grid=grid,
        in_specs=[
            pl.BlockSpec((TB, in_dim), lambda i: (i, 0)),   # raw activation
            pl.BlockSpec((in_dim, h1_p), const),
            pl.BlockSpec((1, h1_p), const),
            pl.BlockSpec((h1_p, h2_p), const),
            pl.BlockSpec((1, h2_p), const),
            pl.BlockSpec((h2_p, out_p), const),
            pl.BlockSpec((1, out_p), const),
        ],
        out_specs=pl.BlockSpec((TB, out_p), lambda i: (i, 0)),
        compiler_params=pltpu.CompilerParams(
            dimension_semantics=("parallel",)),
        cost_estimate=pl.CostEstimate(
            flops=flops, transcendentals=0, bytes_accessed=bytes_accessed),
    )(state, w1p, b1p, w2p, b2p, w3p, b3p)

    # Slice off padded lanes; upcast the bf16 store back to f32 for callers.
    return out[:, :out_dim].astype(jnp.float32)


def init_params(key, state_dim, action_dim, context_dim):
    """Deterministic init mimicking PyTorch nn.Linear default U(-1/sqrt(fan_in), +)."""
    del state_dim  # the module's forward only uses the action_dim -> context_dim MLP
    dims = [(action_dim, 256), (256, 64), (64, context_dim)]
    params = []
    for fan_in, fan_out in dims:
        key, kw, kb = jax.random.split(key, 3)
        bound = 1.0 / jnp.sqrt(float(fan_in))
        w = jax.random.uniform(kw, (fan_in, fan_out), jnp.float32, -bound, bound)
        b = jax.random.uniform(kb, (fan_out,), jnp.float32, -bound, bound)
        params.append((w, b))
    return tuple(params)


if __name__ == "__main__":
    key = jax.random.PRNGKey(0)
    state_dim, action_dim, context_dim = 16, 8, 4
    batch = 2

    pkey, xkey = jax.random.split(key)
    params = init_params(pkey, state_dim, action_dim, context_dim)
    padded_params, out_dim = prepare_params(params)  # one-time padding/cast

    # NOTE: the PyTorch forward feeds `state` through an MLP whose input
    # width is action_dim, so the example input has feature size action_dim.
    x = jax.random.normal(xkey, (batch, action_dim), jnp.float32)

    out = multi_dmodel_forward(x, padded_params, out_dim)
    jax.block_until_ready(out)

    # Plain-JAX f32 reference of the same math (kernel uses bf16 weights /
    # bf16 final store with f32 accumulation -> bf16-appropriate tolerances).
    (w1, b1), (w2, b2), (w3, b3) = params
    ref = jnp.maximum(x @ w1 + b1, 0.0)
    ref = jnp.maximum(ref @ w2 + b2, 0.0)
    ref = ref @ w3 + b3

    assert out.shape == (batch, context_dim)
    assert jnp.allclose(out, ref, atol=5e-2, rtol=5e-2), (out, ref)

    print("KERNEL_OK")
</pallas_src>

<mosaic_0001>
module attributes {stable_mosaic.version = 11 : i64} {
  func.func @_mlp_kernel(%arg0: i32, %arg1: memref<2x8xf32, #tpu.memory_space<vmem>>, %arg2: memref<8x256xbf16, #tpu.memory_space<vmem>>, %arg3: memref<1x256xf32, #tpu.memory_space<vmem>>, %arg4: memref<256x128xbf16, #tpu.memory_space<vmem>>, %arg5: memref<1x128xf32, #tpu.memory_space<vmem>>, %arg6: memref<128x128xbf16, #tpu.memory_space<vmem>>, %arg7: memref<1x128xf32, #tpu.memory_space<vmem>>, %arg8: memref<2x128xbf16, #tpu.memory_space<vmem>>) attributes {dimension_semantics = [#tpu.dimension_semantics<parallel>], iteration_bounds = array<i64: 1>, scalar_prefetch = 0 : i64, scratch_operands = 0 : i64, tpu.core_type = #tpu.core_type<tc>, window_params = [{transform_indices = @transform_0, window_bounds = array<i64: 2, 8>}, {pipeline_mode = #tpu.pipeline_mode<synchronous>, transform_indices = @transform_1, window_bounds = array<i64: 8, 256>}, {pipeline_mode = #tpu.pipeline_mode<synchronous>, transform_indices = @transform_2, window_bounds = array<i64: 1, 256>}, {pipeline_mode = #tpu.pipeline_mode<synchronous>, transform_indices = @transform_3, window_bounds = array<i64: 256, 128>}, {pipeline_mode = #tpu.pipeline_mode<synchronous>, transform_indices = @transform_4, window_bounds = array<i64: 1, 128>}, {pipeline_mode = #tpu.pipeline_mode<synchronous>, transform_indices = @transform_5, window_bounds = array<i64: 128, 128>}, {pipeline_mode = #tpu.pipeline_mode<synchronous>, transform_indices = @transform_6, window_bounds = array<i64: 1, 128>}, {transform_indices = @transform_7, window_bounds = array<i64: 2, 128>}]} {
    %c0 = arith.constant 0 : index
    %c0_0 = arith.constant 0 : index
    %0 = vector.load %arg1[%c0, %c0_0] : memref<2x8xf32, #tpu.memory_space<vmem>>, vector<2x8xf32>
    %1 = arith.truncf %0 : vector<2x8xf32> to vector<2x8xbf16>
    %c0_1 = arith.constant 0 : index
    %c0_2 = arith.constant 0 : index
    %2 = vector.load %arg2[%c0_1, %c0_2] : memref<8x256xbf16, #tpu.memory_space<vmem>>, vector<8x256xbf16>
    %cst = arith.constant dense<0.000000e+00> : vector<2x256xf32>
    %3 = tpu.matmul %1, %2, %cst {dimension_numbers = #tpu.dot_dimension_numbers<[1], [0], [0], [1], [0, 0, 1, 1], [], []>} : vector<2x8xbf16>, vector<8x256xbf16>, vector<2x256xf32> -> vector<2x256xf32>
    %c0_3 = arith.constant 0 : index
    %c0_4 = arith.constant 0 : index
    %4 = vector.load %arg3[%c0_3, %c0_4] : memref<1x256xf32, #tpu.memory_space<vmem>>, vector<1x256xf32>
    %5 = vector.broadcast %4 : vector<1x256xf32> to vector<2x256xf32>
    %6 = arith.addf %3, %5 : vector<2x256xf32>
    %cst_5 = arith.constant 0.000000e+00 : f32
    %7 = vector.broadcast %cst_5 : f32 to vector<2x256xf32>
    %8 = arith.maximumf %6, %7 : vector<2x256xf32>
    %9 = arith.truncf %8 : vector<2x256xf32> to vector<2x256xbf16>
    %c0_6 = arith.constant 0 : index
    %c0_7 = arith.constant 0 : index
    %10 = vector.load %arg4[%c0_6, %c0_7] : memref<256x128xbf16, #tpu.memory_space<vmem>>, vector<256x128xbf16>
    %cst_8 = arith.constant dense<0.000000e+00> : vector<2x128xf32>
    %11 = tpu.matmul %9, %10, %cst_8 {dimension_numbers = #tpu.dot_dimension_numbers<[1], [0], [0], [1], [0, 0, 1, 1], [], []>} : vector<2x256xbf16>, vector<256x128xbf16>, vector<2x128xf32> -> vector<2x128xf32>
    %c0_9 = arith.constant 0 : index
    %c0_10 = arith.constant 0 : index
    %12 = vector.load %arg5[%c0_9, %c0_10] : memref<1x128xf32, #tpu.memory_space<vmem>>, vector<1x128xf32>
    %13 = vector.broadcast %12 : vector<1x128xf32> to vector<2x128xf32>
    %14 = arith.addf %11, %13 : vector<2x128xf32>
    %cst_11 = arith.constant 0.000000e+00 : f32
    %15 = vector.broadcast %cst_11 : f32 to vector<2x128xf32>
    %16 = arith.maximumf %14, %15 : vector<2x128xf32>
    %17 = arith.truncf %16 : vector<2x128xf32> to vector<2x128xbf16>
    %c0_12 = arith.constant 0 : index
    %c0_13 = arith.constant 0 : index
    %18 = vector.load %arg6[%c0_12, %c0_13] : memref<128x128xbf16, #tpu.memory_space<vmem>>, vector<128x128xbf16>
    %cst_14 = arith.constant dense<0.000000e+00> : vector<2x128xf32>
    %19 = tpu.matmul %17, %18, %cst_14 {dimension_numbers = #tpu.dot_dimension_numbers<[1], [0], [0], [1], [0, 0, 1, 1], [], []>} : vector<2x128xbf16>, vector<128x128xbf16>, vector<2x128xf32> -> vector<2x128xf32>
    %c0_15 = arith.constant 0 : index
    %c0_16 = arith.constant 0 : index
    %20 = vector.load %arg7[%c0_15, %c0_16] : memref<1x128xf32, #tpu.memory_space<vmem>>, vector<1x128xf32>
    %21 = vector.broadcast %20 : vector<1x128xf32> to vector<2x128xf32>
    %22 = arith.addf %19, %21 : vector<2x128xf32>
    %23 = arith.truncf %22 : vector<2x128xf32> to vector<2x128xbf16>
    %c0_17 = arith.constant 0 : index
    %c0_18 = arith.constant 0 : index
    %24 = vector.load %arg8[%c0_17, %c0_18] : memref<2x128xbf16, #tpu.memory_space<vmem>>, vector<2x128xbf16>
    tpu.vector_store %arg8[%c0_17, %c0_18], %23 {strides = array<i32>} : memref<2x128xbf16, #tpu.memory_space<vmem>>, vector<2x128xbf16>,
    return
  }
  func.func @transform_0(%arg0: i32) -> (i32, i32) {
    %c0_i32 = arith.constant 0 : i32
    %c0_i32_0 = arith.constant 0 : i32
    return %arg0, %c0_i32 : i32, i32
  }
  func.func @transform_1(%arg0: i32) -> (i32, i32) {
    %c0_i32 = arith.constant 0 : i32
    %c0_i32_0 = arith.constant 0 : i32
    %c0_i32_1 = arith.constant 0 : i32
    return %c0_i32, %c0_i32_0 : i32, i32
  }
  func.func @transform_2(%arg0: i32) -> (i32, i32) {
    %c0_i32 = arith.constant 0 : i32
    %c0_i32_0 = arith.constant 0 : i32
    %c0_i32_1 = arith.constant 0 : i32
    return %c0_i32, %c0_i32_0 : i32, i32
  }
  func.func @transform_3(%arg0: i32) -> (i32, i32) {
    %c0_i32 = arith.constant 0 : i32
    %c0_i32_0 = arith.constant 0 : i32
    %c0_i32_1 = arith.constant 0 : i32
    return %c0_i32, %c0_i32_0 : i32, i32
  }
  func.func @transform_4(%arg0: i32) -> (i32, i32) {
    %c0_i32 = arith.constant 0 : i32
    %c0_i32_0 = arith.constant 0 : i32
    %c0_i32_1 = arith.constant 0 : i32
    return %c0_i32, %c0_i32_0 : i32, i32
  }
  func.func @transform_5(%arg0: i32) -> (i32, i32) {
    %c0_i32 = arith.constant 0 : i32
    %c0_i32_0 = arith.constant 0 : i32
    %c0_i32_1 = arith.constant 0 : i32
    return %c0_i32, %c0_i32_0 : i32, i32
  }
  func.func @transform_6(%arg0: i32) -> (i32, i32) {
    %c0_i32 = arith.constant 0 : i32
    %c0_i32_0 = arith.constant 0 : i32
    %c0_i32_1 = arith.constant 0 : i32
    return %c0_i32, %c0_i32_0 : i32, i32
  }
  func.func @transform_7(%arg0: i32) -> (i32, i32) {
    %c0_i32 = arith.constant 0 : i32
    %c0_i32_0 = arith.constant 0 : i32
    return %arg0, %c0_i32 : i32, i32
  }
}

</mosaic_0001>

<bundles_post_ra>
// kernel: multi_dmodel_forward.1
= control target key start
LH: loop header
LB: loop body
LE: loop exit
PB: predicated region body
PF: predicated region fallthrough
CT: control target
= control target key end

     0   :  { %12 = vsyncpa [#allocation3], 0  ;;  %s770_s0 = inlined_call_operand.hbm [shape: f32[2,8], index: 0, kind: input, shape index: {}]   ;;  %s771_s1 = inlined_call_operand.hbm [shape: bf16[8,256], index: 1, kind: input, shape index: {}]   ;;  %s772_s2 = inlined_call_operand.vmem [shape: f32[1,256], index: 2, kind: input, shape index: {}]   ;;  %s773_s3 = inlined_call_operand.hbm [shape: bf16[256,128], index: 3, kind: input, shape index: {}]   ;;  %s774_s4 = inlined_call_operand.vmem [shape: f32[1,128], index: 4, kind: input, shape index: {}]   ;;  %s775_s5 = inlined_call_operand.hbm [shape: bf16[128,128], index: 5, kind: input, shape index: {}]   ;;  %s776_s6 = inlined_call_operand.vmem [shape: f32[1,128], index: 6, kind: input, shape index: {}]   ;;  %s777_s7 = inlined_call_operand.vmem [shape: bf16[2,128], index: 7, kind: output, shape index: {}]  }
   0x1   :  { %13 = vsyncpa [#allocation5], 0 }
   0x2   :  { %14 = vsyncpa [#allocation8], 0  ;;  %s661_s24 = smov [#allocation4]   ;;  %s662_s26 = smov [#allocation2]  }
   0x3   :  { %s31_s25 = sshll.u32 %s661_s24, 4  ;;  %s21_s27 = sshll.u32 %s662_s26, 4  ;;  %s32_s25 = int_to_ptr.vmem [resolvable:$true] %s31_s25  ;;  %s22_s27 = int_to_ptr.vmem [resolvable:$true] %s21_s27 }
   0x4   :  { %s567_s30 = scalar_lea.hbm %s771_s1, 128 }
   0x5   :  { %p568_p0 = scmp.ne.s32.totalorder %s771_s1, %s567_s30  ;;  %p571_p1 = scmp.lt.u32.totalorder %s567_s30, %s771_s1 }
   0x7   :  { %p573_p2 = pnand %p571_p1, %p568_p0 }
   0x9   :  { %576 = shalt.err (!%p573_p2)
}
   0xa   :  { %s577_s12 = scalar_lea.vmem %s32_s25, 128  ;;  %p582_p4 = scmp.lt.s32.totalorder %s32_s25, %s32_s25 }
   0xb   :  { %p578_p3 = scmp.ne.s32.totalorder %s32_s25, %s577_s12  ;;  %p583_p5 = scmp.lt.s32.totalorder %s577_s12, %s577_s12 }
   0xd   :  { %p584_p6 = por %p583_p5, %p582_p4 }
   0xf   :  { %p585_p7 = pnand %p584_p6, %p578_p3 }
  0x11   :  { %588 = shalt.err (!%p585_p7)
}
  0x12   :  { %34 = dma.hbm_to_vmem [thread:$0]  %s771_s1, 128, %s32_s25, [#allocation5]  }
  0x13   :  { %s589_s17 = scalar_lea.hbm %s770_s0, 32 }
  0x14   :  { %p590_p8 = scmp.ne.s32.totalorder %s770_s0, %s589_s17  ;;  %p593_p9 = scmp.lt.u32.totalorder %s589_s17, %s770_s0 }
  0x16   :  { %p595_p10 = pnand %p593_p9, %p590_p8 }
  0x18   :  { %598 = shalt.err (!%p595_p10)
}
  0x19   :  { %s599_s22 = scalar_lea.vmem %s22_s27, 32  ;;  %p604_p12 = scmp.lt.s32.totalorder %s22_s27, %s22_s27 }
  0x1a   :  { %p600_p11 = scmp.ne.s32.totalorder %s22_s27, %s599_s22  ;;  %p605_p13 = scmp.lt.s32.totalorder %s599_s22, %s599_s22 }
  0x1c   :  { %p606_p0 = por %p605_p13, %p604_p12 }
  0x1e   :  { %p607_p1 = pnand %p606_p0, %p600_p11 }
  0x20   :  { %610 = shalt.err (!%p607_p1)
}
  0x21   :  { %24 = dma.hbm_to_vmem [thread:$0]  %s770_s0, 32, %s22_s27, [#allocation3]  }
  0x22   :  { %s663_s24 = smov [#allocation6]   ;;  %s611_s29 = scalar_lea.hbm %s773_s3, 2048 }
  0x23   :  { %s42_s25 = sshll.u32 %s663_s24, 4  ;;  %p612_p2 = scmp.ne.s32.totalorder %s773_s3, %s611_s29  ;;  %s43_s25 = int_to_ptr.vmem [resolvable:$true] %s42_s25 }
  0x24   :  { %p615_p3 = scmp.lt.u32.totalorder %s611_s29, %s773_s3 }
  0x26   :  { %p617_p4 = pnand %p615_p3, %p612_p2 }
  0x28   :  { %620 = shalt.err (!%p617_p4)
}
  0x29   :  { %s621_s11 = scalar_lea.vmem %s43_s25, 2048  ;;  %p626_p6 = scmp.lt.s32.totalorder %s43_s25, %s43_s25 }
  0x2a   :  { %p622_p5 = scmp.ne.s32.totalorder %s43_s25, %s621_s11  ;;  %p627_p7 = scmp.lt.s32.totalorder %s621_s11, %s621_s11 }
  0x2c   :  { %p628_p8 = por %p627_p7, %p626_p6 }
  0x2e   :  { %p629_p9 = pnand %p628_p8, %p622_p5 }
  0x30   :  { %632 = shalt.err (!%p629_p9)
}
  0x31   :  { %s664_s0 = smov 64   ;;  %s665_s27 = smov 4  }
  0x32   :  { %48 = dma.hbm_to_vmem [thread:$0]  %s773_s3, 2048, %s43_s25, [#allocation5], %s664_s0, %s664_s0, %s665_s27  }
  0x33   :  { %s666_s14 = smov [#allocation7]   ;;  %s633_s18 = scalar_lea.hbm %s775_s5, 1024 }
  0x34   :  { %s56_s15 = sshll.u32 %s666_s14, 4  ;;  %p634_p10 = scmp.ne.s32.totalorder %s775_s5, %s633_s18  ;;  %s57_s15 = int_to_ptr.vmem [resolvable:$true] %s56_s15 }
  0x35   :  { %p637_p11 = scmp.lt.u32.totalorder %s633_s18, %s775_s5 }
  0x37   :  { %p639_p12 = pnand %p637_p11, %p634_p10 }
  0x39   :  { %642 = shalt.err (!%p639_p12)
}
  0x3a   :  { %s643_s1 = scalar_lea.vmem %s57_s15, 1024  ;;  %p648_p0 = scmp.lt.s32.totalorder %s57_s15, %s57_s15 }
  0x3b   :  { %p644_p13 = scmp.ne.s32.totalorder %s57_s15, %s643_s1  ;;  %p649_p1 = scmp.lt.s32.totalorder %s643_s1, %s643_s1 }
  0x3d   :  { %p650_p2 = por %p649_p1, %p648_p0 }
  0x3f   :  { %p651_p3 = pnand %p650_p2, %p644_p13 }
  0x41   :  { %654 = shalt.err (!%p651_p3)
}
  0x42   :  { %62 = dma.hbm_to_vmem [thread:$0]  %s775_s5, 1024, %s57_s15, [#allocation8], %s664_s0, %s664_s0, %s665_s27  }
  0x43   :  { %655 = dma.done.wait [#allocation3], 32  }
  0x44   :  { %656 = vsyncadd [#allocation3], 4294967264 }
  0x45   :  { %657 = dma.done.wait [#allocation5], 2176  }
  0x46   :  { %658 = vsyncadd [#allocation5], 4294965120 }
  0x47   :  { %659 = dma.done.wait [#allocation8], 1024  }
  0x48   :  { %660 = vsyncadd [#allocation8], 4294966272  ;;  %v667_v0 = vmov 0   ;;  %v80_v1 = vld [vmem:[#allocation4] sm:$0xff]  ;;  %vm102_vm0 = vcmask 1043456   ;;  %v543_v5 = vld [vmem:[#allocation6 + $0x40] sm:$0xff]   ;;  %v83_v30 = vlaneseq }
  0x49   :  { %141 = vmatprep.mubr.bf16.mxu0 %v667_v0  ;;  %v78_v2 = vld [vmem:[#allocation2] sm:$0x3]  ;;  %v452_v3 = vcombine.high %v80_v1, %v80_v1  ;;  %v451_v4 = vcombine.low %v80_v1, %v80_v1  ;;  %v544_v6 = vld [vmem:[#allocation6] sm:$0xff]   ;;  %481 = vmatprep.subr.bf16.mxu1 %v543_v5  ;;  %v545_v9 = vld [vmem:[#allocation6 + $0x48] sm:$0xff]   ;;  %vm98_vm1 = vcmask 64512   ;;  %v668_v24 = vmov 0.0  }
  0x4a   :  { %v79_v8 = vpack.c.bf16 %v78_v2, %v78_v2  ;;  %482 = vmatpush3.bf16.msra.mxu1 %v544_v6  ;;  %v546_v10 = vld [vmem:[#allocation6 + $0x8] sm:$0xff]   ;;  %v547_v11 = vld [vmem:[#allocation6 + $0x50] sm:$0xff]   ;;  %v549_v13 = vld [vmem:[#allocation6 + $0x58] sm:$0xff]   ;;  %v84_v31 = vshrl.u32 %v83_v30, 7  ;;  %vm669_vm2 = vmmov 0  }
  0x4b   :  { %453 = vmatprep.subr.msk.bf16.mxu0 %vm102_vm0, %v452_v3  ;;  %v104_v7 = vsel %vm102_vm0, %v451_v4, 0  ;;  %483 = vmatprep.subr.bf16.mxu1 %v545_v9  ;;  %v548_v12 = vld [vmem:[#allocation6 + $0x10] sm:$0xff]   ;;  %v550_v14 = vld [vmem:[#allocation6 + $0x18] sm:$0xff]   ;;  %v551_v15 = vld [vmem:[#allocation6 + $0x60] sm:$0xff]  }
  0x4c   :  { %110 = vmatpush1.bf16.msra.mxu0 %v104_v7  ;;  %v552_v16 = vld [vmem:[#allocation6 + $0x20] sm:$0xff]   ;;  %v553_v17 = vld [vmem:[#allocation6 + $0x68] sm:$0xff]   ;;  %v555_v19 = vld [vmem:[#allocation6 + $0x70] sm:$0xff]   ;;  %v85_v32 = vsub.s32 0, %v84_v31  ;;  %v89_v34 = vsub.s32 1, %v84_v31 }
  0x4d   :  { %v554_v18 = vld [vmem:[#allocation6 + $0x28] sm:$0xff]   ;;  %v556_v20 = vld [vmem:[#allocation6 + $0x30] sm:$0xff]   ;;  %v557_v21 = vld [vmem:[#allocation6 + $0x78] sm:$0xff]   ;;  %512 = vmatprep.subr.bf16.mxu0 %v668_v24 }
  0x4e   :  { %484 = vmatpush3.bf16.msra.mxu1 %v546_v10  ;;  %v558_v22 = vld [vmem:[#allocation6 + $0x38] sm:$0xff]   ;;  %v559_v23 = vld [vmem:[#allocation7] sm:$0xff]   ;;  %v560_v25 = vld [vmem:[#allocation7 + $0x8] sm:$0xff]  }
  0x4f   :  { %454 = vmatmul.mubr.msk.bf16.vlgmr.msra.gmra.mrb[0].mxu0 %vm98_vm1, %v79_v8  ;;  %485 = vmatprep.subr.bf16.mxu1 %v547_v11  ;;  %v561_v26 = vld [vmem:[#allocation7 + $0x10] sm:$0xff]   ;;  %v562_v27 = vld [vmem:[#allocation7 + $0x18] sm:$0xff]   ;;  %v563_v28 = vld [vmem:[#allocation7 + $0x20] sm:$0xff]  }
  0x50   :  { %513 = vmatpush3.bf16.msra.mxu0 %v559_v23  ;;  %v564_v29 = vld [vmem:[#allocation7 + $0x28] sm:$0xff]   ;;  %v81_v33 = vld [vmem:[%s772_s2] sm:$0x3]  ;;  %v566_v48 = vld [vmem:[#allocation7 + $0x38] sm:$0xff]   ;;  %528 = vmatprep.mubr.msk.bf16.mxu0 %vm669_vm2, %v668_v24 }
  0x51   :  { %514 = vmatprep.subr.bf16.mxu0 %v668_v24  ;;  %v86_v35 = vrot.slane %v81_v33, %v85_v32  ;;  %v90_v36 = vrot.slane %v81_v33, %v89_v34  ;;  %v565_v47 = vld [vmem:[#allocation7 + $0x30] sm:$0xff]  }
  0x52   :  { %486 = vmatpush3.bf16.msra.mxu1 %v548_v12  ;;  %v455_v50 = vld [vmem:[%s774_s4] ss:$0 sm:$0xff] }
  0x53   :  { %487 = vmatprep.subr.bf16.mxu1 %v549_v13  ;;  %v472_v58 = vld [vmem:[%s776_s6] ss:$0 sm:$0xff] }
  0x54   :  { %515 = vmatpush3.bf16.msra.mxu0 %v560_v25 }
  0x55   :  { %516 = vmatprep.subr.bf16.mxu0 %v668_v24 }
  0x56   :  { %488 = vmatpush3.bf16.msra.mxu1 %v550_v14 }
  0x57   :  { %489 = vmatprep.subr.bf16.mxu1 %v551_v15 }
  0x58   :  { %517 = vmatpush3.bf16.msra.mxu0 %v561_v26 }
  0x59   :  { %518 = vmatprep.subr.bf16.mxu0 %v668_v24 }
  0x5a   :  { %490 = vmatpush3.bf16.msra.mxu1 %v552_v16 }
  0x5b   :  { %491 = vmatprep.subr.bf16.mxu1 %v553_v17 }
  0x5c   :  { %519 = vmatpush3.bf16.msra.mxu0 %v562_v27 }
  0x5d   :  { %520 = vmatprep.subr.bf16.mxu0 %v668_v24 }
  0x5e   :  { %492 = vmatpush3.bf16.msra.mxu1 %v554_v18 }
  0x5f   :  { %493 = vmatprep.subr.bf16.mxu1 %v555_v19 }
  0x60   :  { %521 = vmatpush3.bf16.msra.mxu0 %v563_v28 }
  0x61   :  { %522 = vmatprep.subr.bf16.mxu0 %v668_v24 }
  0x62   :  { %494 = vmatpush3.bf16.msra.mxu1 %v556_v20 }
  0x63   :  { %495 = vmatprep.subr.bf16.mxu1 %v557_v21 }
  0x64   :  { %523 = vmatpush3.bf16.msra.mxu0 %v564_v29 }
  0x65   :  { %524 = vmatprep.subr.bf16.mxu0 %v668_v24 }
  0x66   :  { %496 = vmatpush3.bf16.msra.mxu1 %v558_v22 }
  0x68   :  { %525 = vmatpush3.bf16.msra.mxu0 %v565_v47 }
  0x69   :  { %526 = vmatprep.subr.bf16.mxu0 %v668_v24 }
  0x6c   :  { %527 = vmatpush3.bf16.msra.mxu0 %v566_v48 }
 0x122   :  { %v143_v37 = vpop.f32.mrb[0].mxu0 }
 0x123   :  { %v144_v38 = vadd.f32 %v143_v37, %v86_v35  ;;  %v145_v39 = vpop.f32.mrb[1].mxu0 }
 0x124   :  { %v146_v40 = vadd.f32 %v145_v39, %v90_v36  ;;  %v147_v41 = vpop.f32.mrb[2].mxu0 }
 0x125   :  { %v150_v42 = vmax.f32 %v144_v38, 0.0  ;;  %v148_v43 = vpop.f32.mrb[3].mxu0 }
 0x126   :  { %v151_v44 = vmax.f32 %v146_v40, 0.0 }
 0x127   :  { %v152_v46 = vpack.c.bf16 %v150_v42, %v150_v42 }
 0x128   :  { %v153_v45 = vpack.c.bf16 %v151_v44, %v151_v44 }
 0x12a   :  { %321 = vmatprep.mubr.bf16.mxu1 %v153_v45 }
 0x12b   :  { %322 = vmatmul.mubr.bf16.vlgmr.msra.gmra.mrb[0].mxu1 %v152_v46 }
 0x1fe   :  { %v497_v49 = vpop.f32.mrb[0].mxu1 }
 0x1ff   :  { %v498_v51 = vpop.f32.mrb[1].mxu1 }
 0x200   :  { %v499_v52 = vadd.f32 %v498_v51, %v497_v49  ;;  %v500_v53 = vpop.f32.mrb[2].mxu1 }
 0x201   :  { %v501_v54 = vpop.f32.mrb[3].mxu1 }
 0x202   :  { %v324_v55 = vadd.f32 %v499_v52, %v455_v50 }
 0x204   :  { %v329_v56 = vmax.f32 %v324_v55, 0.0 }
 0x206   :  { %v330_v57 = vpack.c.bf16 %v329_v56, %v329_v56 }
 0x208   :  { %529 = vmatmul.mubr.bf16.vlgmr.msra.gmra.mrb[4].mxu0 %v330_v57 }
 0x2db   :  { %v436_v59 = vpop.f32.mrb[4].mxu0 }
 0x2dc   :  { %v437_v60 = vadd.f32 %v472_v58, %v436_v59  ;;  %v530_v61 = vpop.f32.mrb[5].mxu0 }
 0x2dd   :  { %v439_v62 = vpop.f32.mrb[6].mxu0 }
 0x2de   :  { %v442_v63 = vpack.c.bf16 %v437_v60, %v437_v60  ;;  %v531_v0 = vpop.f32.mrb[7].mxu0 }
 0x2e0   :  { %443 = vst [vmem:[%s777_s7] sm:$0x1] %v442_v63 }
 0x2e1   :  { %448 = vsyncpa [#allocation3], 1 }
 0x2e2   :  { %449 = vsyncpa [#allocation5], 1 }
 0x2e3   :  { %450 = vsyncpa [#allocation8], 1 }

</bundles_post_ra>
